<compile_context>
chip_gen: v5e
topology: v5e:2x2
jax: 0.10.0
libtpu: 0.0.40
codegen_flags: <defaults>
</compile_context>

<pallas_src>
import jax
import jax.numpy as jnp
from jax.experimental import pallas as pl
from jax.experimental.pallas import tpu as pltpu


def _round_up(n, m):
    return ((n + m - 1) // m) * m


def _mlp_kernel(x_ref, w1_ref, b1_ref, w2_ref, b2_ref, o_ref):
    # Cast x to bf16 in-kernel (x arrives f32; single HBM read, no extra pass).
    x = x_ref[...].astype(jnp.bfloat16)
    # hidden = leaky_relu(x @ W1 + b1, slope=0.01), f32 accumulation on the MXU.
    h = jnp.dot(x, w1_ref[...], preferred_element_type=jnp.float32)
    h = h + b1_ref[...]                      # (tm, H_pad) + (1, H_pad), f32
    h = jnp.maximum(h, 0.01 * h)             # leaky_relu, negative_slope=0.01
    # out = hidden @ W2 + b2 ; second matmul also bf16 on the MXU, f32 accum.
    y = jnp.dot(h.astype(jnp.bfloat16), w2_ref[...],
                preferred_element_type=jnp.float32)
    y = y + b2_ref[...]                      # (tm, O_pad) + (1, O_pad), f32
    o_ref[...] = y.astype(o_ref.dtype)


def prepare_params(w1, b1, w2, b2):
    """One-time parameter preparation (hoisted out of the per-call hot path).

    w1: (In, H), b1: (H,), w2: (H, O), b2: (O,)  ->  padded/casted param dict.
    H and O are zero-padded to multiples of 128 (lane-dense); padding is inert
    because padded hidden units compute leaky_relu(0) = 0 and padded output
    columns/bias entries are 0.
    """
    In, H = w1.shape
    O = w2.shape[1]
    H_pad = _round_up(H, 128)
    O_pad = _round_up(O, 128)

    w1p = jnp.pad(w1, ((0, 0), (0, H_pad - H))) if H_pad != H else w1
    b1p = jnp.pad(b1, ((0, H_pad - H),)) if H_pad != H else b1
    w2p = w2
    if H_pad != H or O_pad != O:
        w2p = jnp.pad(w2, ((0, H_pad - H), (0, O_pad - O)))
    b2p = jnp.pad(b2, ((0, O_pad - O),)) if O_pad != O else b2

    return {
        "w1": w1p.astype(jnp.bfloat16),                      # (In, H_pad) bf16
        "b1": b1p.reshape(1, H_pad).astype(jnp.float32),     # (1,  H_pad) f32
        "w2": w2p.astype(jnp.bfloat16),                      # (H_pad, O_pad) bf16
        "b2": b2p.reshape(1, O_pad).astype(jnp.float32),     # (1,  O_pad) f32
        "In": In, "H": H, "O": O, "H_pad": H_pad, "O_pad": O_pad,
    }


def _choose_tile(B, max_tm=1024):
    """Batch tile: aim for ~2 grid steps (v7x has 2 TCs; on v5e/v6e fewer,
    larger steps just amortize the ~0.35 us/step pipeline overhead).  Tile is a
    multiple of 8 sublanes and capped so VMEM stays comfortable if B is huge."""
    tm = _round_up(max(pl.cdiv(B, 2), 8), 8)
    tm = min(tm, max_tm)
    steps = pl.cdiv(B, tm)
    return tm, steps


def linear_model_forward_padded(x, params, *, max_tm=1024):
    """x: (B, In) f32. Returns the padded (B_pad, O_pad) output; the consumer
    slices [:B, :O] lazily (avoids an extra materialized HBM pass)."""
    B, In = x.shape
    assert In == params["In"]
    H_pad, O_pad = params["H_pad"], params["O_pad"]

    tm, steps = _choose_tile(B, max_tm)
    B_pad = steps * tm
    xp = x if B_pad == B else jnp.pad(x, ((0, B_pad - B), (0, 0)))

    flops = 2 * B_pad * In * H_pad + 2 * B_pad * H_pad * O_pad
    bytes_accessed = (
        B_pad * In * 4                       # x f32 in
        + In * H_pad * 2 + H_pad * 4         # w1 bf16, b1 f32
        + H_pad * O_pad * 2 + O_pad * 4      # w2 bf16, b2 f32
        + B_pad * O_pad * 4                  # out f32
    )

    out = pl.pallas_call(
        _mlp_kernel,
        out_shape=jax.ShapeDtypeStruct((B_pad, O_pad), x.dtype),
        grid=(steps,),
        in_specs=[
            pl.BlockSpec((tm, In), lambda i: (i, 0)),        # x: tiled over batch
            pl.BlockSpec((In, H_pad), lambda i: (0, 0)),     # w1: VMEM-resident
            pl.BlockSpec((1, H_pad), lambda i: (0, 0)),      # b1: resident
            pl.BlockSpec((H_pad, O_pad), lambda i: (0, 0)),  # w2: resident
            pl.BlockSpec((1, O_pad), lambda i: (0, 0)),      # b2: resident
        ],
        out_specs=pl.BlockSpec((tm, O_pad), lambda i: (i, 0)),
        compiler_params=pltpu.CompilerParams(
            # Batch steps are independent -> shard across v7x's two TCs.
            # NOTE(v7x): if In/H/O grow substantially, budget VMEM explicitly
            # (vmem_limit_bytes / pl.Buffered(1) on resident weights); moot at
            # current <100 KiB of parameters.
            dimension_semantics=("parallel",),
        ),
        cost_estimate=pl.CostEstimate(
            flops=flops, transcendentals=0, bytes_accessed=bytes_accessed),
    )(xp, params["w1"], params["b1"], params["w2"], params["b2"])
    return out


def linear_model_forward(x, params, *, max_tm=1024):
    """Convenience wrapper returning the exact (B, O) result."""
    B = x.shape[0]
    out = linear_model_forward_padded(x, params, max_tm=max_tm)
    return out[:B, :params["O"]]


def init_linear_params(key, fan_in, fan_out, dtype=jnp.float32):
    """Deterministic init mimicking torch.nn.Linear default:
    U(-1/sqrt(fan_in), 1/sqrt(fan_in)) for both weight and bias."""
    k_w, k_b = jax.random.split(key)
    bound = 1.0 / jnp.sqrt(jnp.asarray(fan_in, dtype=jnp.float32))
    # stored as (fan_in, fan_out) == PyTorch weight.T
    w = jax.random.uniform(k_w, (fan_in, fan_out), dtype, -bound, bound)
    b = jax.random.uniform(k_b, (fan_out,), dtype, -bound, bound)
    return w, b


if __name__ == "__main__":
    # Shapes consistent with LinearModel(input_size, output_size, hidden_size).
    batch = 256
    input_size = 32
    hidden_size = 64
    output_size = 16

    key = jax.random.PRNGKey(0)
    k_x, k_fc1, k_fc2 = jax.random.split(key, 3)

    x = jax.random.normal(k_x, (batch, input_size), dtype=jnp.float32)
    w1, b1 = init_linear_params(k_fc1, input_size, hidden_size)
    w2, b2 = init_linear_params(k_fc2, hidden_size, output_size)

    # One-time parameter preparation (padding / bf16 casts hoisted off hot path).
    params = prepare_params(w1, b1, w2, b2)

    # Hot path: single fused Pallas call; consumer slices the padded buffer lazily.
    out_padded = linear_model_forward_padded(x, params)
    out_padded = jax.block_until_ready(out_padded)
    out = out_padded[:batch, :output_size]

    # Reference check in plain f32 JAX (same semantics as the PyTorch forward).
    # Tolerance relaxed because the kernel runs bf16 matmul inputs with f32 accumulation.
    h_ref = x @ w1 + b1
    h_ref = jnp.where(h_ref >= 0, h_ref, 0.01 * h_ref)
    y_ref = h_ref @ w2 + b2
    assert out.shape == (batch, output_size)
    assert jnp.allclose(out, y_ref, atol=2e-2, rtol=2e-2), (
        float(jnp.max(jnp.abs(out - y_ref))))

    print("KERNEL_OK")
</pallas_src>

<mosaic_0001>
module attributes {stable_mosaic.version = 11 : i64} {
  func.func @_mlp_kernel(%arg0: i32, %arg1: memref<128x32xf32, #tpu.memory_space<vmem>>, %arg2: memref<32x128xbf16, #tpu.memory_space<vmem>>, %arg3: memref<1x128xf32, #tpu.memory_space<vmem>>, %arg4: memref<128x128xbf16, #tpu.memory_space<vmem>>, %arg5: memref<1x128xf32, #tpu.memory_space<vmem>>, %arg6: memref<128x128xf32, #tpu.memory_space<vmem>>) attributes {dimension_semantics = [#tpu.dimension_semantics<parallel>], iteration_bounds = array<i64: 2>, scalar_prefetch = 0 : i64, scratch_operands = 0 : i64, tpu.core_type = #tpu.core_type<tc>, window_params = [{transform_indices = @transform_0, window_bounds = array<i64: 128, 32>}, {pipeline_mode = #tpu.pipeline_mode<synchronous>, transform_indices = @transform_1, window_bounds = array<i64: 32, 128>}, {pipeline_mode = #tpu.pipeline_mode<synchronous>, transform_indices = @transform_2, window_bounds = array<i64: 1, 128>}, {pipeline_mode = #tpu.pipeline_mode<synchronous>, transform_indices = @transform_3, window_bounds = array<i64: 128, 128>}, {pipeline_mode = #tpu.pipeline_mode<synchronous>, transform_indices = @transform_4, window_bounds = array<i64: 1, 128>}, {transform_indices = @transform_5, window_bounds = array<i64: 128, 128>}]} {
    %c0 = arith.constant 0 : index
    %c0_0 = arith.constant 0 : index
    %0 = vector.load %arg1[%c0, %c0_0] : memref<128x32xf32, #tpu.memory_space<vmem>>, vector<128x32xf32>
    %1 = arith.truncf %0 : vector<128x32xf32> to vector<128x32xbf16>
    %c0_1 = arith.constant 0 : index
    %c0_2 = arith.constant 0 : index
    %2 = vector.load %arg2[%c0_1, %c0_2] : memref<32x128xbf16, #tpu.memory_space<vmem>>, vector<32x128xbf16>
    %cst = arith.constant dense<0.000000e+00> : vector<128x128xf32>
    %3 = tpu.matmul %1, %2, %cst {dimension_numbers = #tpu.dot_dimension_numbers<[1], [0], [0], [1], [0, 0, 1, 1], [], []>} : vector<128x32xbf16>, vector<32x128xbf16>, vector<128x128xf32> -> vector<128x128xf32>
    %c0_3 = arith.constant 0 : index
    %c0_4 = arith.constant 0 : index
    %4 = vector.load %arg3[%c0_3, %c0_4] : memref<1x128xf32, #tpu.memory_space<vmem>>, vector<1x128xf32>
    %5 = vector.broadcast %4 : vector<1x128xf32> to vector<128x128xf32>
    %6 = arith.addf %3, %5 : vector<128x128xf32>
    %cst_5 = arith.constant 0.00999999977 : f32
    %7 = vector.broadcast %cst_5 : f32 to vector<128x128xf32>
    %8 = arith.mulf %7, %6 : vector<128x128xf32>
    %9 = arith.maximumf %6, %8 : vector<128x128xf32>
    %10 = arith.truncf %9 : vector<128x128xf32> to vector<128x128xbf16>
    %c0_6 = arith.constant 0 : index
    %c0_7 = arith.constant 0 : index
    %11 = vector.load %arg4[%c0_6, %c0_7] : memref<128x128xbf16, #tpu.memory_space<vmem>>, vector<128x128xbf16>
    %cst_8 = arith.constant dense<0.000000e+00> : vector<128x128xf32>
    %12 = tpu.matmul %10, %11, %cst_8 {dimension_numbers = #tpu.dot_dimension_numbers<[1], [0], [0], [1], [0, 0, 1, 1], [], []>} : vector<128x128xbf16>, vector<128x128xbf16>, vector<128x128xf32> -> vector<128x128xf32>
    %c0_9 = arith.constant 0 : index
    %c0_10 = arith.constant 0 : index
    %13 = vector.load %arg5[%c0_9, %c0_10] : memref<1x128xf32, #tpu.memory_space<vmem>>, vector<1x128xf32>
    %14 = vector.broadcast %13 : vector<1x128xf32> to vector<128x128xf32>
    %15 = arith.addf %12, %14 : vector<128x128xf32>
    %c0_11 = arith.constant 0 : index
    %c0_12 = arith.constant 0 : index
    %16 = vector.load %arg6[%c0_11, %c0_12] : memref<128x128xf32, #tpu.memory_space<vmem>>, vector<128x128xf32>
    tpu.vector_store %arg6[%c0_11, %c0_12], %15 {strides = array<i32>} : memref<128x128xf32, #tpu.memory_space<vmem>>, vector<128x128xf32>,
    return
  }
  func.func @transform_0(%arg0: i32) -> (i32, i32) {
    %c0_i32 = arith.constant 0 : i32
    %c0_i32_0 = arith.constant 0 : i32
    return %arg0, %c0_i32 : i32, i32
  }
  func.func @transform_1(%arg0: i32) -> (i32, i32) {
    %c0_i32 = arith.constant 0 : i32
    %c0_i32_0 = arith.constant 0 : i32
    %c0_i32_1 = arith.constant 0 : i32
    return %c0_i32, %c0_i32_0 : i32, i32
  }
  func.func @transform_2(%arg0: i32) -> (i32, i32) {
    %c0_i32 = arith.constant 0 : i32
    %c0_i32_0 = arith.constant 0 : i32
    %c0_i32_1 = arith.constant 0 : i32
    return %c0_i32, %c0_i32_0 : i32, i32
  }
  func.func @transform_3(%arg0: i32) -> (i32, i32) {
    %c0_i32 = arith.constant 0 : i32
    %c0_i32_0 = arith.constant 0 : i32
    %c0_i32_1 = arith.constant 0 : i32
    return %c0_i32, %c0_i32_0 : i32, i32
  }
  func.func @transform_4(%arg0: i32) -> (i32, i32) {
    %c0_i32 = arith.constant 0 : i32
    %c0_i32_0 = arith.constant 0 : i32
    %c0_i32_1 = arith.constant 0 : i32
    return %c0_i32, %c0_i32_0 : i32, i32
  }
  func.func @transform_5(%arg0: i32) -> (i32, i32) {
    %c0_i32 = arith.constant 0 : i32
    %c0_i32_0 = arith.constant 0 : i32
    return %arg0, %c0_i32 : i32, i32
  }
}

</mosaic_0001>

<bundles_post_ra>
// kernel: tpu_custom_call.1
= control target key start
LH: loop header
LB: loop body
LE: loop exit
PB: predicated region body
PF: predicated region fallthrough
CT: control target
= control target key end

     0   :  { %10 = vsyncpa [#allocation3], 0  ;;  %s1003_s0 = inlined_call_operand.vmem [shape: f32[256,32], index: 0, kind: input, shape index: {}]   ;;  %s1004_s1 = inlined_call_operand.vmem [shape: bf16[32,128], index: 1, kind: input, shape index: {}]   ;;  %s1005_s2 = inlined_call_operand.vmem [shape: f32[1,128], index: 2, kind: input, shape index: {}]   ;;  %s1006_s3 = inlined_call_operand.vmem [shape: bf16[128,128], index: 3, kind: input, shape index: {}]   ;;  %s1007_s4 = inlined_call_operand.vmem [shape: f32[1,128], index: 4, kind: input, shape index: {}]   ;;  %s1008_s5 = inlined_call_operand.hbm [shape: f32[256,128], index: 5, kind: output, shape index: {}]  }
   0x1   :  { %12 = vsyncpa [#allocation3 + $0x1], 0  ;;  %s816_s18 = smov 0   ;;  %s818_s19 = smov 0  }
   0x2   :  { %s820_s20 = smov 0   ;;  %s822_s21 = smov 0  }
   0x3 LB: > { %s837_s22 = sadd.s32 4294967295, %s782_s21   ;;  %s596_s23 = sadd.s32 4294967294, %s782_s21   ;;  %s782_s21 = sphi %s822_s21, %s1014_s21   ;;  %s778_s20 = sphi %s820_s20, %s1013_s20   ;;  %s774_s19 = sphi %s818_s19, %s1012_s19   ;;  %s770_s18 = sphi %s816_s18, %s1011_s18  }
   0x4   : > { %s841_s24 = sadd.s32 1, %s782_s21   ;;  %s135_s25 = sadd.s32 1, %s778_s20 }
   0x5   : > { %s132_s26 = ssub.s32 %s782_s21, %s841_s24  ;;  %p145_p0 = scmp.ne.s32.totalorder %s778_s20, %s774_s19 }
   0x6   : > { %p133_p1 = scmp.eq.s32.totalorder %s132_s26, 0  ;;  %p146_p2 = scmp.eq.s32.totalorder %s837_s22, 1 }
   0x7   : > { %p151_p3 = scmp.ne.s32.totalorder %s774_s19, %s770_s18  ;;  %p152_p4 = scmp.eq.s32.totalorder %s596_s23, 1 }
   0x8   : > { %s852_s27 = scalar_select %p133_p1, %s778_s20, %s135_s25  }
   0x9   : > { %p854_p5 = por %p146_p2, %p145_p0  ;;  %p858_p6 = por %p152_p4, %p151_p3 }
   0xa   : > { %p599_p7 = scmp.ge.s32.totalorder %s782_s21, 1  ;;  %p191_p8 = scmp.lt.s32.totalorder %s782_s21, 3 }
   0xc   : > { %p192_p9 = pnand %p599_p7, %p191_p8 }
   0xd   : > { %s601_s7 = sshll.u32 (!%p192_p9), %s837_s22, 4  ;;  %s216_s16 = sand.u32 (!%p192_p9), 1, %s774_s19  }
   0xe   : > { %195 = sbr.rel (%p192_p9) target bundleno = 427 (0x1ab), region = 40  ;;  %p220_p10 = scmp.lt.s32.totalorder (!%p192_p9), %s601_s7, 31 }
   0xf   : > { %s600_s17 = sshll.u32 (!%p192_p9), %s216_s16, 7  ;;  %s666_s30 = sshll.u32 (!%p192_p9), %s837_s22, 7 }
  0x10   : > { %s951_s26 = scalar_lea.vmem (!%p192_p9), [#allocation2], %s600_s17  ;;  %s530_s8 = scalar_lea.hbm (!%p192_p9), %s1008_s5, %s666_s30 }
  0x11   : > { %s531_s9 = sshll.u32 (!%p192_p9), %s951_s26, 4  ;;  %s519_s11 = scalar_lea.sflag (!%p192_p9), [#allocation3], %s216_s16  ;;  %s532_s9 = int_to_ptr.vmem [resolvable:$true] %s531_s9 }
  0x12   : > { %s740_s15 = scalar_lea.hbm (!%p192_p9), %s1008_s5, 256 }
  0x13   : > { %v657_v0 = vld [vmem:[%s1004_s1 + $0x8] sm:$0xff]  ;;  %v656_v1 = vld [vmem:[%s1004_s1] sm:$0xff]  ;;  %s1016_s7 = smov (!%p220_p10, %s601_s7), 31  ;;  %vm271_vm0 = vcmask 261120   ;;  %v665_v14 = vld [vmem:[%s1006_s3 + $0x38] sm:$0xff] }
  0x14   : > { %302 = vmatpush.bf16.msra.mxu0 %v657_v0  ;;  %667 = vmatpush.bf16.msra.mxu3 %v657_v0  ;;  %s602_s10 = sshll.u32 %s1016_s7, 3  ;;  %v664_v15 = vld [vmem:[%s1006_s3 + $0x30] sm:$0xff]  ;;  %v663_v16 = vld [vmem:[%s1006_s3 + $0x28] sm:$0xff]  ;;  %v662_v21 = vld [vmem:[%s1006_s3 + $0x20] sm:$0xff] }
  0x15   : > { %s874_s13 = scalar_lea.vmem %s1003_s0, %s602_s10  ;;  %453 = vmatpush.bf16.msra.mxu1 %v665_v14  ;;  %669 = vmatpush.bf16.msra.mxu2 %v665_v14  ;;  %v661_v30 = vld [vmem:[%s1006_s3 + $0x18] sm:$0xff]  ;;  %v660_v31 = vld [vmem:[%s1006_s3 + $0x10] sm:$0xff]  ;;  %v659_v32 = vld [vmem:[%s1006_s3 + $0x8] sm:$0xff]  ;;  %s533_s10 = sshll.u32 %s530_s8, 4  ;;  %s534_s10 = int_to_ptr.hbm [resolvable:$true] %s533_s10 }
  0x16   : > { %v227_v2 = vld [vmem:[%s874_s13] sm:$0xff]  ;;  %v228_v3 = vld [vmem:[%s874_s13 + $0x8] sm:$0xff]  ;;  %v229_v5 = vld [vmem:[%s874_s13 + $0x10] sm:$0xff]  ;;  %s734_s12 = sshra.s32 %s534_s10, 4  ;;  %s735_s12 = int_to_ptr.hbm [resolvable:$true] %s734_s12 }
  0x17   : > { %v243_v4 = vpack.c.bf16 %v228_v3, %v227_v2  ;;  %v230_v6 = vld [vmem:[%s874_s13 + $0x18] sm:$0xff]  ;;  %v231_v8 = vld [vmem:[%s874_s13 + $0x20] sm:$0xff]  ;;  %v232_v9 = vld [vmem:[%s874_s13 + $0x28] sm:$0xff]  ;;  %s736_s22 = scalar_lea.hbm %s735_s12, 128  ;;  %p741_p0 = scmp.lt.s32.totalorder %s735_s12, %s1008_s5 }
  0x18   : > { %303 = vmatpush.bf16.msra.mxu0 %v656_v1  ;;  %668 = vmatpush.bf16.msra.mxu3 %v656_v1  ;;  %v244_v7 = vpack.c.bf16 %v230_v6, %v229_v5  ;;  %v245_v10 = vpack.c.bf16 %v232_v9, %v231_v8  ;;  %v237_v11 = vld [vmem:[%s874_s13 + $0x50] sm:$0xff]  ;;  %v238_v12 = vld [vmem:[%s874_s13 + $0x58] sm:$0xff]  ;;  %v239_v19 = vld [vmem:[%s874_s13 + $0x60] sm:$0xff]  ;;  %p737_p11 = scmp.ne.s32.totalorder %s735_s12, %s736_s22  ;;  %p742_p1 = scmp.lt.s32.totalorder %s740_s15, %s736_s22 }
  0x19   : > { %v248_v13 = vpack.c.bf16 %v238_v12, %v237_v11  ;;  %454 = vmatpush.bf16.msra.mxu1 %v664_v15  ;;  %670 = vmatpush.bf16.msra.mxu2 %v664_v15  ;;  %v233_v17 = vld [vmem:[%s874_s13 + $0x30] sm:$0xff]  ;;  %v234_v18 = vld [vmem:[%s874_s13 + $0x38] sm:$0xff]  ;;  %v240_v20 = vld [vmem:[%s874_s13 + $0x68] sm:$0xff] }
  0x1a   : > { %v246_v22 = vpack.c.bf16 %v234_v18, %v233_v17  ;;  %v249_v23 = vpack.c.bf16 %v240_v20, %v239_v19  ;;  %v235_v24 = vld [vmem:[%s874_s13 + $0x40] sm:$0xff]  ;;  %v236_v25 = vld [vmem:[%s874_s13 + $0x48] sm:$0xff]  ;;  %v241_v26 = vld [vmem:[%s874_s13 + $0x70] sm:$0xff]  ;;  %p738_p12 = pnand %p737_p11, %p854_p5  ;;  %p743_p2 = por %p742_p1, %p741_p0 }
  0x1b   : > { %611 = vmatmul.msk.bf16.vlgmr.msra.gmra.mxu0 %vm271_vm0, %v243_v4  ;;  %616 = vmatmul.msk.bf16.vlgmr.msra.gmra.mxu3 %vm271_vm0, %v248_v13  ;;  %v242_v27 = vld [vmem:[%s874_s13 + $0x78] sm:$0xff]  ;;  %v247_v28 = vpack.c.bf16 %v236_v25, %v235_v24  ;;  %v658_v33 = vld [vmem:[%s1006_s3] sm:$0xff] }
  0x1c   : > { %v250_v29 = vpack.c.bf16 %v242_v27, %v241_v26  ;;  %v927_v35 = vld [vmem:[%s1005_s2] ss:$0 sm:$0xff]  ;;  %p739_p13 = pneg %p738_p12 }
  0x1d   : > { %455 = vmatpush.bf16.msra.mxu1 %v663_v16  ;;  %671 = vmatpush.bf16.msra.mxu2 %v663_v16 }
  0x1e   : > { %p744_p3 = pnand %p743_p2, %p739_p13 }
  0x21   : > { %456 = vmatpush.bf16.msra.mxu1 %v662_v21  ;;  %672 = vmatpush.bf16.msra.mxu2 %v662_v21 }
  0x25   : > { %457 = vmatpush.bf16.msra.mxu1 %v661_v30  ;;  %673 = vmatpush.bf16.msra.mxu2 %v661_v30 }
  0x29   : > { %458 = vmatpush.bf16.msra.mxu1 %v660_v31  ;;  %674 = vmatpush.bf16.msra.mxu2 %v660_v31 }
  0x2b   : > { %612 = vmatmul.msk.bf16.gmra.mxu0 %vm271_vm0, %v244_v7  ;;  %617 = vmatmul.msk.bf16.gmra.mxu3 %vm271_vm0, %v249_v23 }
  0x2d   : > { %459 = vmatpush.bf16.msra.mxu1 %v659_v32  ;;  %675 = vmatpush.bf16.msra.mxu2 %v659_v32 }
  0x31   : > { %460 = vmatpush.bf16.msra.mxu1 %v658_v33  ;;  %676 = vmatpush.bf16.msra.mxu2 %v658_v33 }
  0x3b   : > { %613 = vmatmul.msk.bf16.gmra.mxu0 %vm271_vm0, %v245_v10  ;;  %618 = vmatmul.msk.bf16.gmra.mxu3 %vm271_vm0, %v250_v29 }
  0x4b   : > { %614 = vmatmul.msk.bf16.gmra.mxu0 %vm271_vm0, %v246_v22 }
  0x5b   : > { %615 = vmatmul.msk.bf16.gmra.mxu0 %vm271_vm0, %v247_v28 }
  0x98   : > { %v305_v34 = vpop.f32.mrf.mxu0 }
  0x99   : > { %v306_v36 = vadd.f32 %v927_v35, %v305_v34 }
  0x9b   : > { %v345_v38 = vmul.f32 0.01, %v306_v36 }
  0x9d   : > { %v361_v41 = vmax.f32 %v306_v36, %v345_v38 }
  0x9e   : > { %v330_v6 = vpop.f32.mrf.mxu3 }
  0x9f   : > { %v331_v19 = vadd.f32 %v927_v35, %v330_v6 }
  0xa0   : > { %v307_v37 = vpop.f32.mrf.mxu0 }
  0xa1   : > { %v308_v39 = vadd.f32 %v927_v35, %v307_v37  ;;  %v355_v21 = vmul.f32 0.01, %v331_v19 }
  0xa3   : > { %v346_v40 = vmul.f32 0.01, %v308_v39  ;;  %v371_v23 = vmax.f32 %v331_v19, %v355_v21 }
  0xa5   : > { %v362_v42 = vmax.f32 %v308_v39, %v346_v40 }
  0xa6   : > { %v332_v11 = vpop.f32.mrf.mxu3 }
  0xa7   : > { %v377_v43 = vpack.c.bf16 %v362_v42, %v361_v41  ;;  %v333_v20 = vadd.f32 %v927_v35, %v332_v11 }
  0xa8   : > { %v310_v44 = vpop.f32.mrf.mxu0 }
  0xa9   : > { %461 = vmatmul.bf16.vlgmr.msra.gmra.mxu1 %v377_v43  ;;  %v311_v45 = vadd.f32 %v927_v35, %v310_v44  ;;  %v356_v22 = vmul.f32 0.01, %v333_v20  ;;  %v719_v44 = vld [vmem:[%s1007_s4] ss:$0 sm:$0xff] }
  0xab   : > { %v347_v47 = vmul.f32 0.01, %v311_v45  ;;  %v372_v24 = vmax.f32 %v333_v20, %v356_v22 }
  0xad   : > { %v363_v50 = vmax.f32 %v311_v45, %v347_v47  ;;  %v382_v26 = vpack.c.bf16 %v372_v24, %v371_v23 }
  0xae   : > { %v335_v18 = vpop.f32.mrf.mxu3 }
  0xaf   : > { %v336_v27 = vadd.f32 %v927_v35, %v335_v18 }
  0xb0   : > { %v312_v46 = vpop.f32.mrf.mxu0 }
  0xb1   : > { %v313_v48 = vadd.f32 %v927_v35, %v312_v46  ;;  %v357_v30 = vmul.f32 0.01, %v336_v27 }
  0xb3   : > { %v348_v49 = vmul.f32 0.01, %v313_v48  ;;  %v373_v32 = vmax.f32 %v336_v27, %v357_v30 }
  0xb5   : > { %v364_v51 = vmax.f32 %v313_v48, %v348_v49 }
  0xb6   : > { %v337_v25 = vpop.f32.mrf.mxu3 }
  0xb7   : > { %v378_v52 = vpack.c.bf16 %v364_v51, %v363_v50  ;;  %v338_v28 = vadd.f32 %v927_v35, %v337_v25 }
  0xb8   : > { %v315_v53 = vpop.f32.mrf.mxu0 }
  0xb9   : > { %466 = vmatmul.bf16.gmra.mxu1 %v378_v52  ;;  %v316_v54 = vadd.f32 %v927_v35, %v315_v53  ;;  %v358_v31 = vmul.f32 0.01, %v338_v28 }
  0xbb   : > { %v349_v56 = vmul.f32 0.01, %v316_v54  ;;  %v374_v33 = vmax.f32 %v338_v28, %v358_v31 }
  0xbd   : > { %v365_v59 = vmax.f32 %v316_v54, %v349_v56  ;;  %v383_v34 = vpack.c.bf16 %v374_v33, %v373_v32 }
  0xbe   : > { %v340_v29 = vpop.f32.mrf.mxu3 }
  0xbf   : > { %v341_v37 = vadd.f32 %v927_v35, %v340_v29 }
  0xc0   : > { %v317_v55 = vpop.f32.mrf.mxu0 }
  0xc1   : > { %v318_v57 = vadd.f32 %v927_v35, %v317_v55  ;;  %v359_v39 = vmul.f32 0.01, %v341_v37 }
  0xc3   : > { %v350_v58 = vmul.f32 0.01, %v318_v57  ;;  %v375_v41 = vmax.f32 %v341_v37, %v359_v39 }
  0xc5   : > { %v366_v60 = vmax.f32 %v318_v57, %v350_v58 }
  0xc6   : > { %v342_v36 = vpop.f32.mrf.mxu3 }
  0xc7   : > { %v379_v61 = vpack.c.bf16 %v366_v60, %v365_v59  ;;  %v343_v38 = vadd.f32 %v927_v35, %v342_v36 }
  0xc8   : > { %v320_v62 = vpop.f32.mrf.mxu0 }
  0xc9   : > { %471 = vmatmul.bf16.gmra.mxu1 %v379_v61  ;;  %v321_v63 = vadd.f32 %v927_v35, %v320_v62  ;;  %v360_v40 = vmul.f32 0.01, %v343_v38 }
  0xcb   : > { %v351_v1 = vmul.f32 0.01, %v321_v63  ;;  %v376_v42 = vmax.f32 %v343_v38, %v360_v40 }
  0xcd   : > { %v367_v4 = vmax.f32 %v321_v63, %v351_v1  ;;  %v384_v43 = vpack.c.bf16 %v376_v42, %v375_v41 }
  0xd0   : > { %v322_v0 = vpop.f32.mrf.mxu0 }
  0xd1   : > { %v323_v2 = vadd.f32 %v927_v35, %v322_v0 }
  0xd3   : > { %v352_v3 = vmul.f32 0.01, %v323_v2 }
  0xd5   : > { %v368_v5 = vmax.f32 %v323_v2, %v352_v3 }
  0xd7   : > { %v380_v7 = vpack.c.bf16 %v368_v5, %v367_v4 }
  0xd8   : > { %v325_v8 = vpop.f32.mrf.mxu0 }
  0xd9   : > { %476 = vmatmul.bf16.gmra.mxu1 %v380_v7  ;;  %v326_v9 = vadd.f32 %v927_v35, %v325_v8 }
  0xdb   : > { %v353_v12 = vmul.f32 0.01, %v326_v9 }
  0xdd   : > { %v369_v15 = vmax.f32 %v326_v9, %v353_v12 }
  0xe0   : > { %v327_v10 = vpop.f32.mrf.mxu0 }
  0xe1   : > { %v328_v13 = vadd.f32 %v927_v35, %v327_v10 }
  0xe3   : > { %v354_v14 = vmul.f32 0.01, %v328_v13 }
  0xe5   : > { %v370_v16 = vmax.f32 %v328_v13, %v354_v14 }
  0xe7   : > { %v381_v17 = vpack.c.bf16 %v370_v16, %v369_v15 }
  0xe9   : > { %481 = vmatmul.bf16.vlgmr.msra.gmra.mxu2 %v381_v17 }
  0xf9   : > { %486 = vmatmul.bf16.gmra.mxu2 %v382_v26 }
 0x109   : > { %491 = vmatmul.bf16.gmra.mxu2 %v383_v34 }
 0x119   : > { %496 = vmatmul.bf16.gmra.mxu2 %v384_v43 }
 0x126   : > { %v462_v45 = vpop.f32.mrf.mxu1 }
 0x127   : > { %v463_v46 = vadd.f32 %v719_v44, %v462_v45 }
 0x129   : > { %502 = vst [vmem:[%s951_s26] sm:$0xff] %v463_v46 }
 0x12e   : > { %v464_v35 = vpop.f32.mrf.mxu1 }
 0x12f   : > { %v465_v47 = vadd.f32 %v719_v44, %v464_v35 }
 0x131   : > { %503 = vst [vmem:[%s951_s26 + $0x8] sm:$0xff] %v465_v47 }
 0x136   : > { %v467_v48 = vpop.f32.mrf.mxu1 }
 0x137   : > { %v468_v49 = vadd.f32 %v719_v44, %v467_v48 }
 0x139   : > { %504 = vst [vmem:[%s951_s26 + $0x10] sm:$0xff] %v468_v49 }
 0x13e   : > { %v469_v50 = vpop.f32.mrf.mxu1 }
 0x13f   : > { %v470_v51 = vadd.f32 %v719_v44, %v469_v50 }
 0x141   : > { %505 = vst [vmem:[%s951_s26 + $0x18] sm:$0xff] %v470_v51 }
 0x146   : > { %v472_v52 = vpop.f32.mrf.mxu1 }
 0x147   : > { %v473_v53 = vadd.f32 %v719_v44, %v472_v52 }
 0x149   : > { %506 = vst [vmem:[%s951_s26 + $0x20] sm:$0xff] %v473_v53 }
 0x14e   : > { %v474_v54 = vpop.f32.mrf.mxu1 }
 0x14f   : > { %v475_v55 = vadd.f32 %v719_v44, %v474_v54 }
 0x151   : > { %507 = vst [vmem:[%s951_s26 + $0x28] sm:$0xff] %v475_v55 }
 0x156   : > { %v477_v56 = vpop.f32.mrf.mxu1 }
 0x157   : > { %v478_v57 = vadd.f32 %v719_v44, %v477_v56 }
 0x159   : > { %508 = vst [vmem:[%s951_s26 + $0x30] sm:$0xff] %v478_v57 }
 0x15e   : > { %v479_v58 = vpop.f32.mrf.mxu1 }
 0x15f   : > { %v480_v59 = vadd.f32 %v719_v44, %v479_v58 }
 0x161   : > { %509 = vst [vmem:[%s951_s26 + $0x38] sm:$0xff] %v480_v59 }
 0x16c   : > { %v482_v60 = vpop.f32.mrf.mxu2 }
 0x16d   : > { %v483_v61 = vadd.f32 %v719_v44, %v482_v60 }
 0x16f   : > { %510 = vst [vmem:[%s951_s26 + $0x40] sm:$0xff] %v483_v61 }
 0x174   : > { %v484_v62 = vpop.f32.mrf.mxu2 }
 0x175   : > { %v485_v63 = vadd.f32 %v719_v44, %v484_v62 }
 0x177   : > { %511 = vst [vmem:[%s951_s26 + $0x48] sm:$0xff] %v485_v63 }
 0x17c   : > { %v487_v0 = vpop.f32.mrf.mxu2 }
 0x17d   : > { %v488_v1 = vadd.f32 %v719_v44, %v487_v0 }
 0x17f   : > { %512 = vst [vmem:[%s951_s26 + $0x50] sm:$0xff] %v488_v1 }
 0x184   : > { %v489_v2 = vpop.f32.mrf.mxu2 }
 0x185   : > { %v490_v3 = vadd.f32 %v719_v44, %v489_v2 }
 0x187   : > { %513 = vst [vmem:[%s951_s26 + $0x58] sm:$0xff] %v490_v3 }
 0x18c   : > { %v492_v4 = vpop.f32.mrf.mxu2 }
 0x18d   : > { %v493_v5 = vadd.f32 %v719_v44, %v492_v4 }
 0x18f   : > { %514 = vst [vmem:[%s951_s26 + $0x60] sm:$0xff] %v493_v5 }
 0x194   : > { %v494_v6 = vpop.f32.mrf.mxu2 }
 0x195   : > { %v495_v7 = vadd.f32 %v719_v44, %v494_v6 }
 0x197   : > { %515 = vst [vmem:[%s951_s26 + $0x68] sm:$0xff] %v495_v7 }
 0x19c   : > { %v497_v8 = vpop.f32.mrf.mxu2 }
 0x19d   : > { %v498_v9 = vadd.f32 %v719_v44, %v497_v8 }
 0x19f   : > { %516 = vst [vmem:[%s951_s26 + $0x70] sm:$0xff] %v498_v9 }
 0x1a4   : > { %v499_v10 = vpop.f32.mrf.mxu2 }
 0x1a5   : > { %v500_v11 = vadd.f32 %v719_v44, %v499_v10 }
 0x1a7   : > { %517 = vst [vmem:[%s951_s26 + $0x78] sm:$0xff] %v500_v11 }
 0x1a8   : > { %747 = shalt.err (!%p744_p3)
}
 0x1a9   : > { %s784_s16 = smov 128   ;;  %s785_s25 = smov 8  }
 0x1aa   : > { %677 = dma.vmem_to_hbm [thread:$0]  (%p854_p5), %s532_s9, 2048, %s534_s10, %s519_s11, %s784_s16, %s784_s16, %s785_s25  }
 0x1ab PF: > { %p683_p4 = scmp.ge.s32.totalorder %s782_s21, 2  ;;  %s548_s26 = sand.u32 1, %s770_s18  }
 0x1ac   : > { %s549_s30 = scalar_lea.sflag [#allocation3], %s548_s26 }
 0x1ad   : > { %p680_p7 = pnand %p683_p4, %p858_p6 }
 0x1af   : > { %p681_p8 = pneg %p680_p7 }
 0x1b1   : > { %765 = dma.done.wait (%p681_p8), %s549_s30, 2048  }
 0x1b2   : > { %767 = vsyncadd (%p681_p8), %s549_s30, 4294965248  ;;  %p15_p9 = scmp.ge.s32.totalorder %s841_s24, 4   ;;  %s1011_s18 = smov %s774_s19 }
 0x1b3   : > { %s1012_s19 = smov %s778_s20  ;;  %s1013_s20 = smov %s852_s27 }
 0x1b4   : > { %s1014_s21 = smov %s841_s24  ;;  %17 = sbr.rel (!%p15_p9) target bundleno = 3 (0x3), region = 75 }
 0x1b9   :  { %555 = vsyncpa [#allocation3], 1 }
 0x1ba   :  { %557 = vsyncpa [#allocation3 + $0x1], 1 }

</bundles_post_ra>
